<compile_context>
chip_gen: v7x
topology: tpu7x:2x2x1
jax: 0.10.0
libtpu: 0.0.40
codegen_flags: <defaults>
</compile_context>

<pallas_src>
import functools

import jax
import jax.numpy as jnp
from jax.experimental import pallas as pl
from jax.experimental.pallas import tpu as pltpu


def _round_up(x, m):
    return ((x + m - 1) // m) * m


def _q_kernel(state_ref, action_ref,
              w1_ref, b1_ref,
              w2s_ref, w2a_ref, b2_ref,
              w3_ref,
              out_ref):
    # Layer 1 (MXU, bf16 in / f32 acc): relu(state @ W1 + b1)
    xs = jnp.dot(state_ref[...], w1_ref[...],
                 preferred_element_type=jnp.float32)
    xs = jnp.maximum(xs + b1_ref[...], 0.0)

    # Layer 2: relu(concat([xs, action]) @ W2 + b2)
    #          == relu(xs @ W2s + action @ W2a + b2)
    h = (jnp.dot(xs.astype(jnp.bfloat16), w2s_ref[...],
                 preferred_element_type=jnp.float32)
         + jnp.dot(action_ref[...], w2a_ref[...],
                   preferred_element_type=jnp.float32))
    h = jnp.maximum(h + b2_ref[...], 0.0)

    # Output layer (N=1): VPU multiply + lane (XLU) reduction instead of a
    # 1-column MXU matmul.  b3 is added in the wrapper.
    out_ref[...] = jnp.sum(h * w3_ref[...], axis=-1, keepdims=True)


def init_params(key, state_size, action_size, hidden_layer_sizes=(128, 128)):
    """f32 'logical' params mirroring the PyTorch module, stored (in, out)."""
    h1, h2 = hidden_layer_sizes
    k1, k2, k3, k4, k5, k6 = jax.random.split(key, 6)

    lim1 = 1.0 / (float(h1) ** 0.5)   # hidden_init uses weight.size()[0]
    lim2 = 1.0 / (float(h2) ** 0.5)

    w1 = jax.random.uniform(k1, (state_size, h1), jnp.float32, -lim1, lim1)
    b1 = jax.random.uniform(k2, (h1,), jnp.float32, -lim1, lim1)

    w2 = jax.random.uniform(k3, (h1 + action_size, h2), jnp.float32,
                            -lim2, lim2)
    b2 = jax.random.uniform(k4, (h2,), jnp.float32, -lim2, lim2)

    w3 = jax.random.uniform(k5, (h2, 1), jnp.float32, -0.003, 0.003)
    b3 = jax.random.uniform(k6, (1,), jnp.float32, -0.003, 0.003)

    return (w1, b1, w2, b2, w3, b3)


def prepare_kernel_params(params, action_size):
    """Convert logical f32 params to kernel-ready operands.

    Weights -> bf16, W2 split into (state-half, action-half) with the action
    half zero-padded to a multiple of 8 rows, W3 as a lane-dense (1, H2) f32
    row, biases f32, b3 kept as a host-side scalar.
    """
    w1, b1, w2, b2, w3, b3 = params
    h1 = w1.shape[1]
    a_pad = _round_up(max(action_size, 1), 8)

    w2s = w2[:h1, :]
    w2a = jnp.pad(w2[h1:, :], ((0, a_pad - action_size), (0, 0)))

    return (
        w1.astype(jnp.bfloat16),
        b1.reshape(1, -1).astype(jnp.float32),
        w2s.astype(jnp.bfloat16),
        w2a.astype(jnp.bfloat16),
        b2.reshape(1, -1).astype(jnp.float32),
        w3.reshape(1, -1).astype(jnp.float32),
        jnp.asarray(b3, jnp.float32).reshape(()),
    )


@functools.partial(jax.jit, static_argnames=("tb",))
def q_network_forward(state, action, kparams, tb=256):
    """Critic forward pass: one pallas_call tiled over the batch."""
    w1, b1, w2s, w2a, b2, w3, b3 = kparams

    B, S = state.shape
    A = action.shape[1]
    H1 = w1.shape[1]
    H2 = w2s.shape[1]
    A_pad = w2a.shape[0]

    # Batch tile: multiple of 8 (sublane), capped at `tb`; pad B up to it.
    TB = min(tb, _round_up(B, 8))
    B_pad = _round_up(B, TB)

    state_p = jnp.pad(state.astype(jnp.bfloat16), ((0, B_pad - B), (0, 0)))
    action_p = jnp.pad(action.astype(jnp.bfloat16),
                       ((0, B_pad - B), (0, A_pad - A)))

    out = pl.pallas_call(
        _q_kernel,
        out_shape=jax.ShapeDtypeStruct((B_pad, 1), jnp.float32),
        grid=(B_pad // TB,),
        in_specs=[
            pl.BlockSpec((TB, S), lambda i: (i, 0)),        # state tile
            pl.BlockSpec((TB, A_pad), lambda i: (i, 0)),    # action tile
            pl.BlockSpec((S, H1), lambda i: (0, 0)),        # W1 (resident)
            pl.BlockSpec((1, H1), lambda i: (0, 0)),        # b1
            pl.BlockSpec((H1, H2), lambda i: (0, 0)),       # W2 (state half)
            pl.BlockSpec((A_pad, H2), lambda i: (0, 0)),    # W2 (action half)
            pl.BlockSpec((1, H2), lambda i: (0, 0)),        # b2
            pl.BlockSpec((1, H2), lambda i: (0, 0)),        # W3 as a row
        ],
        out_specs=pl.BlockSpec((TB, 1), lambda i: (i, 0)),
        compiler_params=pltpu.CompilerParams(
            dimension_semantics=("parallel",)),
    )(state_p, action_p, w1, b1, w2s, w2a, b2, w3)

    return out[:B] + b3   # fold the scalar output bias in the wrapper


def _reference(state, action, params):
    """Plain-JAX f32 reference matching the PyTorch forward semantics."""
    w1, b1, w2, b2, w3, b3 = params
    xs = jnp.maximum(state @ w1 + b1, 0.0)
    x = jnp.concatenate([xs, action], axis=1)
    h = jnp.maximum(x @ w2 + b2, 0.0)
    return h @ w3 + b3


# TODO(synk): torch.save / torch.load checkpoint I/O (and the LOAD flag) have
# no Pallas equivalent and are not part of the forward pass.

if __name__ == "__main__":
    key = jax.random.PRNGKey(0)
    k_params, k_state, k_action, k_state2, k_action2 = jax.random.split(key, 5)

    batch = 32
    state_size = 16
    action_size = 4
    hidden_layer_sizes = (128, 128)

    params = init_params(k_params, state_size, action_size, hidden_layer_sizes)
    kparams = prepare_kernel_params(params, action_size)

    state = jax.random.normal(k_state, (batch, state_size), jnp.float32)
    action = jax.random.normal(k_action, (batch, action_size), jnp.float32)

    # Multi-step batch grid (TB=8 -> 4 grid steps).
    q = q_network_forward(state, action, kparams, tb=8)
    jax.block_until_ready(q)
    q_ref = _reference(state, action, params)
    assert q.shape == (batch, 1)
    assert jnp.allclose(q, q_ref, atol=2e-2, rtol=2e-2), "mismatch vs reference"

    # Ragged batch (not a multiple of the tile) exercises the padding path.
    b2_ = 13
    state2 = jax.random.normal(k_state2, (b2_, state_size), jnp.float32)
    action2 = jax.random.normal(k_action2, (b2_, action_size), jnp.float32)
    q2 = q_network_forward(state2, action2, kparams)
    jax.block_until_ready(q2)
    q2_ref = _reference(state2, action2, params)
    assert q2.shape == (b2_, 1)
    assert jnp.allclose(q2, q2_ref, atol=2e-2, rtol=2e-2), "mismatch (ragged)"

    print("KERNEL_OK")
</pallas_src>

<mosaic_0001>
module attributes {stable_mosaic.version = 11 : i64} {
  func.func @_q_kernel(%arg0: i32, %arg1: memref<8x16xbf16, #tpu.memory_space<vmem>>, %arg2: memref<8x8xbf16, #tpu.memory_space<vmem>>, %arg3: memref<16x128xbf16, #tpu.memory_space<vmem>>, %arg4: memref<1x128xf32, #tpu.memory_space<vmem>>, %arg5: memref<128x128xbf16, #tpu.memory_space<vmem>>, %arg6: memref<8x128xbf16, #tpu.memory_space<vmem>>, %arg7: memref<1x128xf32, #tpu.memory_space<vmem>>, %arg8: memref<1x128xf32, #tpu.memory_space<vmem>>, %arg9: memref<8x1xf32, #tpu.memory_space<vmem>>) attributes {dimension_semantics = [#tpu.dimension_semantics<parallel>], iteration_bounds = array<i64: 4>, scalar_prefetch = 0 : i64, scratch_operands = 0 : i64, tpu.core_type = #tpu.core_type<tc>, window_params = [{transform_indices = @transform_0, window_bounds = array<i64: 8, 16>}, {transform_indices = @transform_1, window_bounds = array<i64: 8, 8>}, {pipeline_mode = #tpu.pipeline_mode<synchronous>, transform_indices = @transform_2, window_bounds = array<i64: 16, 128>}, {pipeline_mode = #tpu.pipeline_mode<synchronous>, transform_indices = @transform_3, window_bounds = array<i64: 1, 128>}, {pipeline_mode = #tpu.pipeline_mode<synchronous>, transform_indices = @transform_4, window_bounds = array<i64: 128, 128>}, {pipeline_mode = #tpu.pipeline_mode<synchronous>, transform_indices = @transform_5, window_bounds = array<i64: 8, 128>}, {pipeline_mode = #tpu.pipeline_mode<synchronous>, transform_indices = @transform_6, window_bounds = array<i64: 1, 128>}, {pipeline_mode = #tpu.pipeline_mode<synchronous>, transform_indices = @transform_7, window_bounds = array<i64: 1, 128>}, {transform_indices = @transform_8, window_bounds = array<i64: 8, 1>}]} {
    %c0 = arith.constant 0 : index
    %c0_0 = arith.constant 0 : index
    %0 = vector.load %arg1[%c0, %c0_0] : memref<8x16xbf16, #tpu.memory_space<vmem>>, vector<8x16xbf16>
    %c0_1 = arith.constant 0 : index
    %c0_2 = arith.constant 0 : index
    %1 = vector.load %arg3[%c0_1, %c0_2] : memref<16x128xbf16, #tpu.memory_space<vmem>>, vector<16x128xbf16>
    %cst = arith.constant dense<0.000000e+00> : vector<8x128xf32>
    %2 = tpu.matmul %0, %1, %cst {dimension_numbers = #tpu.dot_dimension_numbers<[1], [0], [0], [1], [0, 0, 1, 1], [], []>} : vector<8x16xbf16>, vector<16x128xbf16>, vector<8x128xf32> -> vector<8x128xf32>
    %c0_3 = arith.constant 0 : index
    %c0_4 = arith.constant 0 : index
    %3 = vector.load %arg4[%c0_3, %c0_4] : memref<1x128xf32, #tpu.memory_space<vmem>>, vector<1x128xf32>
    %4 = vector.broadcast %3 : vector<1x128xf32> to vector<8x128xf32>
    %5 = arith.addf %2, %4 : vector<8x128xf32>
    %cst_5 = arith.constant 0.000000e+00 : f32
    %6 = vector.broadcast %cst_5 : f32 to vector<8x128xf32>
    %7 = arith.maximumf %5, %6 : vector<8x128xf32>
    %8 = arith.truncf %7 : vector<8x128xf32> to vector<8x128xbf16>
    %c0_6 = arith.constant 0 : index
    %c0_7 = arith.constant 0 : index
    %9 = vector.load %arg5[%c0_6, %c0_7] : memref<128x128xbf16, #tpu.memory_space<vmem>>, vector<128x128xbf16>
    %cst_8 = arith.constant dense<0.000000e+00> : vector<8x128xf32>
    %10 = tpu.matmul %8, %9, %cst_8 {dimension_numbers = #tpu.dot_dimension_numbers<[1], [0], [0], [1], [0, 0, 1, 1], [], []>} : vector<8x128xbf16>, vector<128x128xbf16>, vector<8x128xf32> -> vector<8x128xf32>
    %c0_9 = arith.constant 0 : index
    %c0_10 = arith.constant 0 : index
    %11 = vector.load %arg2[%c0_9, %c0_10] : memref<8x8xbf16, #tpu.memory_space<vmem>>, vector<8x8xbf16>
    %c0_11 = arith.constant 0 : index
    %c0_12 = arith.constant 0 : index
    %12 = vector.load %arg6[%c0_11, %c0_12] : memref<8x128xbf16, #tpu.memory_space<vmem>>, vector<8x128xbf16>
    %cst_13 = arith.constant dense<0.000000e+00> : vector<8x128xf32>
    %13 = tpu.matmul %11, %12, %cst_13 {dimension_numbers = #tpu.dot_dimension_numbers<[1], [0], [0], [1], [0, 0, 1, 1], [], []>} : vector<8x8xbf16>, vector<8x128xbf16>, vector<8x128xf32> -> vector<8x128xf32>
    %14 = arith.addf %10, %13 : vector<8x128xf32>
    %c0_14 = arith.constant 0 : index
    %c0_15 = arith.constant 0 : index
    %15 = vector.load %arg7[%c0_14, %c0_15] : memref<1x128xf32, #tpu.memory_space<vmem>>, vector<1x128xf32>
    %16 = vector.broadcast %15 : vector<1x128xf32> to vector<8x128xf32>
    %17 = arith.addf %14, %16 : vector<8x128xf32>
    %cst_16 = arith.constant 0.000000e+00 : f32
    %18 = vector.broadcast %cst_16 : f32 to vector<8x128xf32>
    %19 = arith.maximumf %17, %18 : vector<8x128xf32>
    %c0_17 = arith.constant 0 : index
    %c0_18 = arith.constant 0 : index
    %20 = vector.load %arg8[%c0_17, %c0_18] : memref<1x128xf32, #tpu.memory_space<vmem>>, vector<1x128xf32>
    %21 = vector.broadcast %20 : vector<1x128xf32> to vector<8x128xf32>
    %22 = arith.mulf %19, %21 : vector<8x128xf32>
    %cst_19 = arith.constant dense<0.000000e+00> : vector<8xf32>
    %23 = vector.multi_reduction <add>, %22, %cst_19 [1] : vector<8x128xf32> to vector<8xf32>
    %24 = vector.shape_cast %23 : vector<8xf32> to vector<8x1xf32>
    %c0_20 = arith.constant 0 : index
    %c0_21 = arith.constant 0 : index
    %25 = vector.load %arg9[%c0_20, %c0_21] : memref<8x1xf32, #tpu.memory_space<vmem>>, vector<8x1xf32>
    tpu.vector_store %arg9[%c0_20, %c0_21], %24 {strides = array<i32>} : memref<8x1xf32, #tpu.memory_space<vmem>>, vector<8x1xf32>,
    return
  }
  func.func @transform_0(%arg0: i32) -> (i32, i32) {
    %c0_i32 = arith.constant 0 : i32
    %c0_i32_0 = arith.constant 0 : i32
    return %arg0, %c0_i32 : i32, i32
  }
  func.func @transform_1(%arg0: i32) -> (i32, i32) {
    %c0_i32 = arith.constant 0 : i32
    %c0_i32_0 = arith.constant 0 : i32
    return %arg0, %c0_i32 : i32, i32
  }
  func.func @transform_2(%arg0: i32) -> (i32, i32) {
    %c0_i32 = arith.constant 0 : i32
    %c0_i32_0 = arith.constant 0 : i32
    %c0_i32_1 = arith.constant 0 : i32
    return %c0_i32, %c0_i32_0 : i32, i32
  }
  func.func @transform_3(%arg0: i32) -> (i32, i32) {
    %c0_i32 = arith.constant 0 : i32
    %c0_i32_0 = arith.constant 0 : i32
    %c0_i32_1 = arith.constant 0 : i32
    return %c0_i32, %c0_i32_0 : i32, i32
  }
  func.func @transform_4(%arg0: i32) -> (i32, i32) {
    %c0_i32 = arith.constant 0 : i32
    %c0_i32_0 = arith.constant 0 : i32
    %c0_i32_1 = arith.constant 0 : i32
    return %c0_i32, %c0_i32_0 : i32, i32
  }
  func.func @transform_5(%arg0: i32) -> (i32, i32) {
    %c0_i32 = arith.constant 0 : i32
    %c0_i32_0 = arith.constant 0 : i32
    %c0_i32_1 = arith.constant 0 : i32
    return %c0_i32, %c0_i32_0 : i32, i32
  }
  func.func @transform_6(%arg0: i32) -> (i32, i32) {
    %c0_i32 = arith.constant 0 : i32
    %c0_i32_0 = arith.constant 0 : i32
    %c0_i32_1 = arith.constant 0 : i32
    return %c0_i32, %c0_i32_0 : i32, i32
  }
  func.func @transform_7(%arg0: i32) -> (i32, i32) {
    %c0_i32 = arith.constant 0 : i32
    %c0_i32_0 = arith.constant 0 : i32
    %c0_i32_1 = arith.constant 0 : i32
    return %c0_i32, %c0_i32_0 : i32, i32
  }
  func.func @transform_8(%arg0: i32) -> (i32, i32) {
    %c0_i32 = arith.constant 0 : i32
    %c0_i32_0 = arith.constant 0 : i32
    return %arg0, %c0_i32 : i32, i32
  }
}

</mosaic_0001>

<bundles_post_ra>
// kernel: q_network_forward.1
= control target key start
LH: loop header
LB: loop body
LE: loop exit
PB: predicated region body
PF: predicated region fallthrough
CT: control target
= control target key end

     0   :  { %s764_s27 = smov 0   ;;  %s830_s0 = inlined_call_operand.vmem [shape: bf16[32,16], index: 0, kind: input, shape index: {}]   ;;  %s831_s1 = inlined_call_operand.vmem [shape: bf16[32,8], index: 1, kind: input, shape index: {}]   ;;  %s832_s2 = inlined_call_operand.vmem [shape: bf16[16,128], index: 2, kind: input, shape index: {}]   ;;  %s833_s3 = inlined_call_operand.vmem [shape: f32[1,128], index: 3, kind: input, shape index: {}]   ;;  %s834_s4 = inlined_call_operand.vmem [shape: bf16[128,128], index: 4, kind: input, shape index: {}]   ;;  %s835_s5 = inlined_call_operand.vmem [shape: bf16[8,128], index: 5, kind: input, shape index: {}]   ;;  %s836_s6 = inlined_call_operand.vmem [shape: f32[1,128], index: 6, kind: input, shape index: {}]   ;;  %s837_s7 = inlined_call_operand.vmem [shape: f32[1,128], index: 7, kind: input, shape index: {}]   ;;  %s838_s8 = inlined_call_operand.vmem [shape: f32[32,1], index: 8, kind: output, shape index: {}]  }
   0x1 LB: > { %s621_s28 = sadd.s32 4294967295, %s715_s27   ;;  %p625_p0 = scmp.ge.s32.totalorder %s715_s27, 1  ;;  %s715_s27 = sphi %s764_s27, %s18_s27  }
   0x2   : > { %p270_p1 = scmp.lt.s32.totalorder %s715_s27, 5 }
   0x4   : > { %p271_p2 = pnand %p625_p0, %p270_p1 }
   0x5   : > { %v700_v0 = vld [vmem:[%s832_s2] sm:$0xff] (!%p271_p2)   ;;  %v717_v1 = vmov (!%p271_p2), 0.0   ;;  %p306_p3 = scmp.lt.s32.totalorder (!%p271_p2), %s621_s28, 3  ;;  %vm718_vm0 = vmmov (!%p271_p2), 0   ;;  %v702_v3 = vld [vmem:[%s834_s4 + $0x8] sm:$0xff] (!%p271_p2)   ;;  %vm335_vm1 = vcmask (!%p271_p2), 130048  }
   0x6   : > { %274 = sbr.rel (%p271_p2) target bundleno = 598 (0x256), region = 52  ;;  %658 = vmatprep.subr.bf16.mxu1 (!%p271_p2), %v717_v1  ;;  %670 = vmatprep.subr.bf16.mxu0 (!%p271_p2), %v717_v1  ;;  %v701_v2 = vld [vmem:[%s834_s4] sm:$0xff] (!%p271_p2)   ;;  %vm403_vm2 = vcmask (!%p271_p2), 1043456   ;;  %v703_v5 = vld [vmem:[%s834_s4 + $0x10] sm:$0xff] (!%p271_p2)   ;;  %v704_v8 = vld [vmem:[%s834_s4 + $0x18] sm:$0xff] (!%p271_p2)   ;;  %vm399_vm3 = vcmask (!%p271_p2), 64512  }
   0x7   : > { %659 = vmatpush3.bf16.msra.mxu1 (!%p271_p2), %v700_v0  ;;  %660 = vmatprep.mubr.msk.bf16.mxu1 (!%p271_p2), %vm718_vm0, %v717_v1  ;;  %v398_v6 = vld [vmem:[%s835_s5] sm:$0xf] (!%p271_p2)  ;;  %v706_v10 = vld [vmem:[%s834_s4 + $0x28] sm:$0xff] (!%p271_p2)   ;;  %v707_v11 = vld [vmem:[%s834_s4 + $0x30] sm:$0xff] (!%p271_p2)   ;;  %vm554_vm4 = vcmask (!%p271_p2), 7168  }
   0x8   : > { %671 = vmatpush3.bf16.msra.mxu0 (!%p271_p2), %v701_v2  ;;  %664 = vmatprep.subr.bf16.mxu1 (!%p271_p2), %v717_v1  ;;  %v405_v7 = vsel (!%p271_p2), %vm403_vm2, %v398_v6, 0  ;;  %v705_v9 = vld [vmem:[%s834_s4 + $0x20] sm:$0xff] (!%p271_p2)   ;;  %v708_v12 = vld [vmem:[%s834_s4 + $0x38] sm:$0xff] (!%p271_p2)  }
   0x9   : > { %672 = vmatprep.subr.bf16.mxu0 (!%p271_p2), %v717_v1  ;;  %686 = vmatprep.mubr.msk.bf16.mxu0 (!%p271_p2), %vm718_vm0, %v717_v1  ;;  %v629_v14 = vld [vmem:[%s833_s3] ss:$0 sm:$0xff] (!%p271_p2) }
   0xa   : > { %v641_v27 = vld [vmem:[%s836_s6] ss:$0 sm:$0xff] (!%p271_p2) }
   0xb   : > { %v642_v33 = vld [vmem:[%s837_s7] ss:$0 sm:$0xff] (!%p271_p2) }
   0xc   : > { %673 = vmatpush3.bf16.msra.mxu0 (!%p271_p2), %v702_v3 }
   0xd   : > { %s840_s28 = smov (!%p306_p3, %s621_s28), 3  ;;  %674 = vmatprep.subr.bf16.mxu0 %v717_v1 }
   0xe   : > { %s626_s13 = sshll.u32 %s840_s28, 2  ;;  %s628_s20 = sshll.u32 %s840_s28, 3 }
   0xf   : > { %s309_s16 = scalar_lea.vmem %s830_s0, %s626_s13  ;;  %s313_s11 = scalar_lea.vmem %s831_s1, %s626_s13 }
  0x10   : > { %v319_v4 = vld [vmem:[%s309_s16] sm:$0xf]  ;;  %675 = vmatpush3.bf16.msra.mxu0 %v703_v5  ;;  %s317_s23 = scalar_lea.vmem %s838_s8, %s628_s20 }
  0x11   : > { %661 = vmatmul.mubr.msk.bf16.vlgmr.msra.gmra.mrb[0].mxu1 %vm335_vm1, %v319_v4  ;;  %676 = vmatprep.subr.bf16.mxu0 %v717_v1  ;;  %v397_v13 = vld [vmem:[%s313_s11] sm:$0xf] }
  0x12   : > { %665 = vmatpush3.bf16.msra.mxu1 %v405_v7  ;;  %666 = vmatprep.mubr.msk.bf16.mxu1 %vm718_vm0, %v717_v1 }
  0x14   : > { %677 = vmatpush3.bf16.msra.mxu0 %v704_v8 }
  0x15   : > { %678 = vmatprep.subr.bf16.mxu0 %v717_v1 }
  0x18   : > { %679 = vmatpush3.bf16.msra.mxu0 %v705_v9 }
  0x19   : > { %680 = vmatprep.subr.bf16.mxu0 %v717_v1  ;;  %667 = vmatmul.mubr.msk.bf16.vlgmr.msra.gmra.mrb[4].mxu1 %vm399_vm3, %v397_v13 }
  0x1c   : > { %681 = vmatpush3.bf16.msra.mxu0 %v706_v10 }
  0x1d   : > { %682 = vmatprep.subr.bf16.mxu0 %v717_v1 }
  0x20   : > { %683 = vmatpush3.bf16.msra.mxu0 %v707_v11 }
  0x21   : > { %684 = vmatprep.subr.bf16.mxu0 %v717_v1 }
  0x24   : > { %685 = vmatpush3.bf16.msra.mxu0 %v708_v12 }
  0xe4   : > { %v373_v15 = vpop.f32.mrb[0].mxu1 }
  0xe5   : > { %v374_v16 = vadd.f32 %v629_v14, %v373_v15  ;;  %v662_v17 = vpop.f32.mrb[1].mxu1 }
  0xe6   : > { %v376_v18 = vpop.f32.mrb[2].mxu1 }
  0xe7   : > { %v379_v19 = vmax.f32 %v374_v16, 0.0  ;;  %v663_v20 = vpop.f32.mrb[3].mxu1 }
  0xe9   : > { %v380_v21 = vpack.c.bf16 %v379_v19, %v379_v19 }
  0xeb   : > { %687 = vmatmul.mubr.bf16.vlgmr.msra.gmra.mrb[0].mxu0 %v380_v21 }
  0xec   : > { %v441_v22 = vpop.f32.mrb[4].mxu1 }
  0xed   : > { %v668_v23 = vpop.f32.mrb[5].mxu1 }
  0xee   : > { %v444_v24 = vpop.f32.mrb[6].mxu1 }
  0xef   : > { %v669_v25 = vpop.f32.mrb[7].mxu1 }
 0x1be   : > { %v529_v26 = vpop.f32.mrb[0].mxu0 }
 0x1bf   : > { %v530_v28 = vadd.f32 %v529_v26, %v441_v22  ;;  %v688_v29 = vpop.f32.mrb[1].mxu0 }
 0x1c0   : > { %v532_v30 = vpop.f32.mrb[2].mxu0 }
 0x1c1   : > { %v689_v31 = vpop.f32.mrb[3].mxu0  ;;  %v542_v32 = vadd.f32 %v641_v27, %v530_v28 }
 0x1c3   : > { %v543_v34 = vmax.f32 %v542_v32, 0.0 }
 0x1c5   : > { %v551_v35 = vmul.f32 %v642_v33, %v543_v34 }
 0x1c7   : > { %552 = vadd.xlane.f32.xlu0 %v551_v35 }
 0x254   : > { %v553_v36 = vpop.xlane.xlu0 %552 }
 0x255   : > { %555 = vst.msk [vmem:[%s317_s23] sm:$0xff] %vm554_vm4, %v553_v36 }
 0x256 PF: > { %s18_s27 = sadd.s32 1, %s715_s27  }
 0x257   : > { %p15_p4 = scmp.ge.s32.totalorder %s18_s27, 6  }
 0x259   :  { %17 = sbr.rel (!%p15_p4) target bundleno = 1 (0x1), region = 85 }

</bundles_post_ra>
